<compile_context>
chip_gen: v6e
topology: v6e:2x2x1
jax: 0.10.0
libtpu: 0.0.40
codegen_flags: <defaults>
</compile_context>

<pallas_src>
import jax
import jax.numpy as jnp
from jax.experimental import pallas as pl
from jax.experimental.pallas import tpu as pltpu


def _tanh_policy_kernel(x_ref, w_ref, b_ref, o_ref):
    # x_ref: [TB, H], w_ref: [H, A], b_ref: [1, A], o_ref: [TB, A]
    acc = jnp.dot(x_ref[...], w_ref[...], preferred_element_type=jnp.float32)
    acc = acc + b_ref[...].astype(jnp.float32)        # f32 bias add (broadcast over batch)
    o_ref[...] = jnp.tanh(acc).astype(o_ref.dtype)    # tanh on EUP in f32, cast on store


def _round_up(x, m):
    return ((x + m - 1) // m) * m


def _vmem_limits():
    """(tile-picker budget, compiler scoped-VMEM limit), generation-aware."""
    try:
        cap = pltpu.get_tpu_info().vmem_capacity_bytes   # 128 MiB v5e/v6e, 64 MiB/TC v7x
    except Exception:  # pragma: no cover - older jax / non-TPU tracing
        cap = 64 * 1024 * 1024
    limit = min(cap // 2, 64 * 1024 * 1024)              # leave headroom for the runtime
    budget = (limit * 3) // 4                             # picker budget <= compiler limit
    return budget, limit


def _pick_batch_tile(B, H, A, itemsize, vmem_budget_bytes):
    """Batch tile size (multiple of 8, or == B for tiny batches).

    Constraints:
      * 2x-buffered x/out tiles + 2x resident weight/bias fit in the budget
        (Pallas double-buffers even constant-index blocks).
      * >= 2 grid steps when B > 8 (v7x has 2 TensorCores; "parallel" can only
        shard grid steps).
      * per-step activation DMA ~1 MiB when the budget allows, so the ~0.35 us
        per-grid-step overhead is amortized.
    """
    fixed = 2 * (H * A + A) * itemsize                   # double-buffered weight + bias
    per_row = 2 * (H + A) * itemsize                     # double-buffered x row + out row
    max_rows = max(8, (vmem_budget_bytes - fixed) // per_row)

    if B <= 8:
        return B                                         # single tiny block, TB == full dim

    half_rows = _round_up(pl.cdiv(B, 2), 8)              # guarantees >= 2 grid steps
    target_rows = _round_up(pl.cdiv(1 << 20, max(H * itemsize, 1)), 8)  # ~1 MiB per step

    tb = min(int(max_rows), int(half_rows), max(int(target_rows), 8))
    tb = max(8, (tb // 8) * 8)
    return tb


def tanh_policy(features, weight, bias, *, compute_dtype=None):
    """features: [B, H], weight: [H, A], bias: [A] -> actions: [B, A].

    compute_dtype: optional lower-precision dtype (e.g. jnp.bfloat16) used for
    the DMA'd activations/weights and the MXU matmul; accumulation, bias add
    and tanh remain f32 and the output keeps the original features dtype.
    """
    B, H = features.shape
    H2, A = weight.shape
    assert H == H2 and bias.shape == (A,)

    out_dtype = features.dtype
    if compute_dtype is not None and jnp.dtype(compute_dtype) != features.dtype:
        # NOTE: in a real deployment the weight cast would be cached across calls.
        features = features.astype(compute_dtype)
        weight = weight.astype(compute_dtype)

    bias2d = bias.reshape(1, A)

    itemsize = jnp.dtype(features.dtype).itemsize
    budget, vmem_limit = _vmem_limits()
    TB = _pick_batch_tile(B, H, A, itemsize, budget)
    grid = (pl.cdiv(B, TB),)

    out = pl.pallas_call(
        _tanh_policy_kernel,
        out_shape=jax.ShapeDtypeStruct((B, A), out_dtype),
        grid_spec=pltpu.PrefetchScalarGridSpec(
            num_scalar_prefetch=0,
            grid=grid,
            in_specs=[
                pl.BlockSpec((TB, H), lambda i: (i, 0)),   # batch-tiled activations
                pl.BlockSpec((H, A), lambda i: (0, 0)),    # resident weight (full block)
                pl.BlockSpec((1, A), lambda i: (0, 0)),    # resident bias
            ],
            out_specs=pl.BlockSpec((TB, A), lambda i: (i, 0)),  # unpadded [TB, A] writeback
        ),
        compiler_params=pltpu.CompilerParams(
            dimension_semantics=("parallel",),             # independent batch tiles
            vmem_limit_bytes=int(vmem_limit),
        ),
    )(features, weight, bias2d)

    return out


def orthogonal_init(key, shape, gain=1.0, dtype=jnp.float32):
    """Deterministic orthogonal init matching torch.nn.init.orthogonal_ semantics."""
    rows, cols = shape
    flat_shape = (max(rows, cols), min(rows, cols))
    a = jax.random.normal(key, flat_shape, dtype=jnp.float32)
    q, r = jnp.linalg.qr(a)
    d = jnp.sign(jnp.diag(r))                              # sign fix as in torch
    q = q * d[None, :]
    if rows < cols:
        q = q.T
    return (gain * q[:rows, :cols]).astype(dtype)


if __name__ == "__main__":
    hidden_dim, action_dim = 32, 8
    dtype = jnp.float32
    kernel_init_scale = 1.0

    key = jax.random.PRNGKey(0)
    k_feat, k_w, k_feat2 = jax.random.split(key, 3)

    # nn.Linear weight is [action_dim, hidden_dim]; we store transposed [hidden_dim, action_dim].
    w_torch_layout = orthogonal_init(k_w, (action_dim, hidden_dim),
                                     gain=kernel_init_scale, dtype=dtype)
    weight = w_torch_layout.T                       # [hidden_dim, action_dim]
    bias = jnp.zeros((action_dim,), dtype=dtype)    # orthogonal_init_ zeros the bias

    # --- small batch (single block, TB == B) -------------------------------
    B = 8
    features = jax.random.normal(k_feat, (B, hidden_dim), dtype=dtype)
    actions = tanh_policy(features, weight, bias)
    jax.block_until_ready(actions)
    ref = jnp.tanh(features @ weight + bias)
    assert actions.shape == (B, action_dim)
    assert jnp.allclose(actions, ref, atol=1e-5, rtol=1e-5), "mismatch vs reference (small)"

    # --- larger batch (multi-step grid, exercises batch tiling) ------------
    B2 = 256
    features2 = jax.random.normal(k_feat2, (B2, hidden_dim), dtype=dtype)
    actions2 = tanh_policy(features2, weight, bias)
    jax.block_until_ready(actions2)
    ref2 = jnp.tanh(features2 @ weight + bias)
    assert actions2.shape == (B2, action_dim)
    assert jnp.allclose(actions2, ref2, atol=1e-5, rtol=1e-5), "mismatch vs reference (tiled)"

    # --- bf16 compute path (halves HBM read traffic; f32 epilogue) ---------
    actions_bf16 = tanh_policy(features2, weight, bias, compute_dtype=jnp.bfloat16)
    jax.block_until_ready(actions_bf16)
    assert actions_bf16.dtype == dtype
    assert jnp.allclose(actions_bf16, ref2, atol=3e-2, rtol=3e-2), "mismatch vs reference (bf16)"

    print("KERNEL_OK")
</pallas_src>

<mosaic_0001>
module attributes {stable_mosaic.version = 11 : i64} {
  func.func @_tanh_policy_kernel(%arg0: i32, %arg1: memref<8x32xf32, #tpu.memory_space<vmem>>, %arg2: memref<32x8xf32, #tpu.memory_space<vmem>>, %arg3: memref<1x8xf32, #tpu.memory_space<vmem>>, %arg4: memref<8x8xf32, #tpu.memory_space<vmem>>) attributes {dimension_semantics = [#tpu.dimension_semantics<parallel>], iteration_bounds = array<i64: 1>, scalar_prefetch = 0 : i64, scratch_operands = 0 : i64, tpu.core_type = #tpu.core_type<tc>, window_params = [{transform_indices = @transform_0, window_bounds = array<i64: 8, 32>}, {pipeline_mode = #tpu.pipeline_mode<synchronous>, transform_indices = @transform_1, window_bounds = array<i64: 32, 8>}, {pipeline_mode = #tpu.pipeline_mode<synchronous>, transform_indices = @transform_2, window_bounds = array<i64: 1, 8>}, {transform_indices = @transform_3, window_bounds = array<i64: 8, 8>}]} {
    %c0 = arith.constant 0 : index
    %c0_0 = arith.constant 0 : index
    %0 = vector.load %arg1[%c0, %c0_0] : memref<8x32xf32, #tpu.memory_space<vmem>>, vector<8x32xf32>
    %c0_1 = arith.constant 0 : index
    %c0_2 = arith.constant 0 : index
    %1 = vector.load %arg2[%c0_1, %c0_2] : memref<32x8xf32, #tpu.memory_space<vmem>>, vector<32x8xf32>
    %cst = arith.constant dense<0.000000e+00> : vector<8x8xf32>
    %2 = tpu.matmul %0, %1, %cst {dimension_numbers = #tpu.dot_dimension_numbers<[1], [0], [0], [1], [0, 0, 1, 1], [], []>} : vector<8x32xf32>, vector<32x8xf32>, vector<8x8xf32> -> vector<8x8xf32>
    %c0_3 = arith.constant 0 : index
    %c0_4 = arith.constant 0 : index
    %3 = vector.load %arg3[%c0_3, %c0_4] : memref<1x8xf32, #tpu.memory_space<vmem>>, vector<1x8xf32>
    %4 = vector.broadcast %3 : vector<1x8xf32> to vector<8x8xf32>
    %5 = arith.addf %2, %4 : vector<8x8xf32>
    %6 = math.tanh %5 : vector<8x8xf32>
    %c0_5 = arith.constant 0 : index
    %c0_6 = arith.constant 0 : index
    %7 = vector.load %arg4[%c0_5, %c0_6] : memref<8x8xf32, #tpu.memory_space<vmem>>, vector<8x8xf32>
    tpu.vector_store %arg4[%c0_5, %c0_6], %6 {strides = array<i32>} : memref<8x8xf32, #tpu.memory_space<vmem>>, vector<8x8xf32>,
    return
  }
  func.func @transform_0(%arg0: i32) -> (i32, i32) {
    %c0_i32 = arith.constant 0 : i32
    %c0_i32_0 = arith.constant 0 : i32
    return %arg0, %c0_i32 : i32, i32
  }
  func.func @transform_1(%arg0: i32) -> (i32, i32) {
    %c0_i32 = arith.constant 0 : i32
    %c0_i32_0 = arith.constant 0 : i32
    %c0_i32_1 = arith.constant 0 : i32
    return %c0_i32, %c0_i32_0 : i32, i32
  }
  func.func @transform_2(%arg0: i32) -> (i32, i32) {
    %c0_i32 = arith.constant 0 : i32
    %c0_i32_0 = arith.constant 0 : i32
    %c0_i32_1 = arith.constant 0 : i32
    return %c0_i32, %c0_i32_0 : i32, i32
  }
  func.func @transform_3(%arg0: i32) -> (i32, i32) {
    %c0_i32 = arith.constant 0 : i32
    %c0_i32_0 = arith.constant 0 : i32
    return %arg0, %c0_i32 : i32, i32
  }
}

</mosaic_0001>

<bundles_post_ra>
// kernel: tpu_custom_call.1
= control target key start
LH: loop header
LB: loop body
LE: loop exit
PB: predicated region body
PF: predicated region fallthrough
CT: control target
= control target key end

     0   :  { %v163_v1 = vmov 0.0   ;;  %vm164_vm0 = vmmov 0   ;;  %s207_s0 = inlined_call_operand.vmem [shape: f32[8,32], index: 0, kind: input, shape index: {}]   ;;  %s208_s1 = inlined_call_operand.vmem [shape: f32[32,8], index: 1, kind: input, shape index: {}]   ;;  %s209_s2 = inlined_call_operand.vmem [shape: f32[1,8], index: 2, kind: input, shape index: {}]   ;;  %s210_s3 = inlined_call_operand.hbm [shape: f32[8,8], index: 3, kind: output, shape index: {}]  }
   0x1   :  { %v19_v0 = vld [vmem:[%s208_s1 + $0x18] sm:$0xff]  ;;  %125 = vmatprep.subr.mxu0 %v163_v1  ;;  %v18_v2 = vld [vmem:[%s208_s1 + $0x10] sm:$0xff]  ;;  %133 = vmatprep.mubr.msk.f32.mxu0 %vm164_vm0, %v163_v1 }
   0x2   :  { %126 = vmatpush3.msra.mxu0 %v19_v0 }
   0x3   :  { %8 = vsyncpa [#allocation3], 0  ;;  %127 = vmatprep.subr.mxu0 %v163_v1  ;;  %v17_v3 = vld [vmem:[%s208_s1 + $0x8] sm:$0xff]  ;;  %v16_v4 = vld [vmem:[%s208_s1] sm:$0xff]  ;;  %vm27_vm1 = vcmask 261120   ;;  %s165_s24 = smov [#allocation2]  }
   0x4   :  { %128 = vmatpush3.msra.mxu0 %v18_v2  ;;  %v15_v5 = vld [vmem:[%s207_s0] sm:$0xff]  ;;  %s110_s25 = sshll.u32 %s165_s24, 4  ;;  %vm102_vm2 = vcmask 64512   ;;  %s111_s25 = int_to_ptr.vmem [resolvable:$true] %s110_s25 }
   0x5   :  { %129 = vmatprep.subr.mxu0 %v163_v1  ;;  %v118_v6 = vld [vmem:[%s209_s2] ss:$0 sm:$0xff]  ;;  %s141_s1 = scalar_lea.vmem %s111_s25, 128  ;;  %p146_p1 = scmp.lt.s32.totalorder %s111_s25, %s111_s25 }
   0x6   :  { %130 = vmatpush3.msra.mxu0 %v17_v3  ;;  %p142_p0 = scmp.ne.s32.totalorder %s111_s25, %s141_s1  ;;  %p147_p2 = scmp.lt.s32.totalorder %s141_s1, %s141_s1 }
   0x7   :  { %131 = vmatprep.subr.mxu0 %v163_v1 }
   0x8   :  { %132 = vmatpush3.msra.mxu0 %v16_v4  ;;  %p148_p3 = por %p147_p2, %p146_p1 }
   0x9   :  { %134 = vmatmul.mubr.msk.f32.vlgmr.msra.gmra.mxu0 %vm27_vm1, %v15_v5 }
   0xa   :  { %p149_p4 = pnand %p148_p3, %p142_p0 }
  0xc9   :  { %v97_v7 = vpop.f32.mrf.mxu0 }
  0xca   :  { %v98_v8 = vadd.f32 %v118_v6, %v97_v7 }
  0xcb   :  { %v135_v9 = vpop.f32.mrf.mxu0 }
  0xcc   :  { %139 = vtanh.f32 %v98_v8 }
  0xd9   :  { %v140_v10 = vpop.eup %139 }
  0xda   :  { %103 = vst.msk [vmem:[#allocation2] sm:$0xff] %vm102_vm2, %v140_v10 }
  0xdb   :  { %152 = shalt.err (!%p149_p4)
}
  0xdc   :  { %113 = dma.vmem_to_hbm [thread:$0]  %s111_s25, 128, %s210_s3, [#allocation3]  }
  0xdd   :  { %161 = dma.done.wait [#allocation3], 128  }
  0xde   :  { %162 = vsyncadd [#allocation3], 4294967168 }
  0xdf   :  { %117 = vsyncpa [#allocation3], 1 }

</bundles_post_ra>
